<compile_context>
chip_gen: v7x
topology: tpu7x:2x2x1
jax: 0.10.0
libtpu: 0.0.40
codegen_flags: <defaults>
</compile_context>

<pallas_src>
import functools

import jax
import jax.numpy as jnp
from jax.experimental import pallas as pl
from jax.experimental.pallas import tpu as pltpu


def _elu_plus_one(x):
    # torch.nn.functional.elu(x) + 1 == x + 1 (x > 0) else exp(x).
    # exp argument clamped so the discarded branch never produces inf.
    return jnp.where(x > 0, x + 1.0, jnp.exp(jnp.minimum(x, 0.0)))


def _mixture_kernel(eps, dims, w_ref, q_ref, k_ref, v_ref, klen_ref, out_ref):
    """One (batch element, L-tile) of the mixture linear attention.

    Grid = (N, L // TILE_L).  Ref block shapes (lane-dense, flattened layouts):
      w_ref    : (C,)            SMEM, softmax(weights), scalar-prefetched
      q_ref    : (TL, C*H*D)     queries, original (c, h, d) lane order
      k_ref    : (S,  C*H*D)     keys
      v_ref    : (S,  H*M)       values, (h, m) lane order
      klen_ref : (S,  1)         key-length mask
      out_ref  : (TL, H*M)       lane-fused output slab (== row-major (TL,H,M))
    """
    C, H, D, M = dims
    f32 = jnp.float32
    bf16 = jnp.bfloat16

    # Feature map + key-length masking: once per grid step for ALL (c, h).
    klen = klen_ref[...].astype(f32)                               # (S, 1)
    k_all = _elu_plus_one(k_ref[...].astype(f32)) * klen           # (S, C*H*D)
    q_all = _elu_plus_one(q_ref[...].astype(f32))                  # (TL, C*H*D)

    head_outs = []
    for h in range(H):
        # Gather the C per-component column blocks of head h into contiguous
        # (.., C*D) slabs (cheap VMEM lane moves, done once per head).
        k_h = jnp.concatenate(
            [k_all[:, (c * H + h) * D:(c * H + h + 1) * D] for c in range(C)],
            axis=1)                                                 # (S, C*D)
        q_h = jnp.concatenate(
            [q_all[:, (c * H + h) * D:(c * H + h + 1) * D] for c in range(C)],
            axis=1)                                                 # (TL, C*D)
        v_h = v_ref[:, h * M:(h + 1) * M].astype(f32)               # (S, M)

        # KV for all C components in ONE MXU contraction over S (bf16 in,
        # f32 accumulate).
        kv = jax.lax.dot_general(
            k_h.astype(bf16), v_h.astype(bf16),
            (((0,), (0,)), ((), ())),
            preferred_element_type=f32)                             # (C*D, M)

        # Denominator + mixture weight folded into a per-column rescale of Q:
        #   q'[l, c*D+d] = w_c * z[l, c] * q[l, c, d]
        # so the numerator collapses to a single (TL, C*D) @ (C*D, M) matmul.
        ksum = jnp.sum(k_h, axis=0, keepdims=True)                  # (1, C*D)
        prod = q_h * ksum                                           # (TL, C*D)
        scaled = []
        for c in range(C):
            denom = jnp.sum(prod[:, c * D:(c + 1) * D], axis=-1,
                            keepdims=True)                          # (TL, 1)
            z = pl.reciprocal(denom + eps, approx=True)             # EUP slot
            scaled.append(q_h[:, c * D:(c + 1) * D] * (w_ref[c] * z))
        q_scaled = jnp.concatenate(scaled, axis=1)                  # (TL, C*D)

        head_outs.append(
            jnp.dot(q_scaled.astype(bf16), kv.astype(bf16),
                    preferred_element_type=f32))                    # (TL, M)

    # Single lane-dense store of the whole (TL, H*M) slab.
    out_ref[...] = jnp.concatenate(head_outs, axis=1).astype(out_ref.dtype)


def _choose_tile_l(L, max_tile=512):
    """Largest L-tile <= max_tile that evenly divides L (multiple of 8 if
    possible)."""
    if L <= max_tile:
        return L
    for t in range(max_tile, 7, -1):
        if L % t == 0 and t % 8 == 0:
            return t
    return L


def mixture_linear_attention(queries, keys, values, key_lengths, weights,
                             eps=1e-6, max_tile_l=512):
    """queries (N,L,C,H,D), keys (N,S,C,H,D), values (N,S,H,M),
    key_lengths (N,S) float mask, weights (C,). Returns (N,L,H,M) float32."""
    N, L, C, H, D = queries.shape
    _, S, _, _, _ = keys.shape
    M = values.shape[-1]
    CHD = C * H * D
    HM = H * M

    # Tiny glue only: softmax of the C mixture weights plus metadata-only
    # reshapes (the flattened axes are contiguous) — no transposes / relayouts
    # of the big tensors.
    w_sm = jax.nn.softmax(weights.astype(jnp.float32), axis=-1)     # (C,)
    q2 = queries.reshape(N, L, CHD)
    k2 = keys.reshape(N, S, CHD)
    v2 = values.reshape(N, S, HM)
    klen = key_lengths.astype(jnp.float32).reshape(N, S, 1)

    tile_l = _choose_tile_l(L, max_tile_l)
    n_lt = L // tile_l

    # Explicit VMEM budget: double-buffered blocks + in-kernel f32 temporaries,
    # clamped to 64 MiB so it stays valid on v7x (64 MiB physical per TC).
    in_bytes = ((tile_l + S) * CHD * queries.dtype.itemsize
                + S * HM * values.dtype.itemsize + S * 4)
    out_bytes = tile_l * HM * 4
    tmp_bytes = 3 * (tile_l + S) * CHD * 4
    vmem_limit = int(min(max(2 * (in_bytes + out_bytes) + tmp_bytes + (4 << 20),
                             16 << 20), 64 << 20))

    grid_spec = pltpu.PrefetchScalarGridSpec(
        num_scalar_prefetch=1,
        grid=(N, n_lt),
        in_specs=[
            pl.BlockSpec((None, tile_l, CHD), lambda n, lt, w: (n, lt, 0)),
            pl.BlockSpec((None, S, CHD), lambda n, lt, w: (n, 0, 0)),
            pl.BlockSpec((None, S, HM), lambda n, lt, w: (n, 0, 0)),
            pl.BlockSpec((None, S, 1), lambda n, lt, w: (n, 0, 0)),
        ],
        out_specs=pl.BlockSpec((None, tile_l, HM), lambda n, lt, w: (n, lt, 0)),
    )

    out_flat = pl.pallas_call(
        functools.partial(_mixture_kernel, eps, (C, H, D, M)),
        out_shape=jax.ShapeDtypeStruct((N, L, HM), jnp.float32),
        grid_spec=grid_spec,
        compiler_params=pltpu.CompilerParams(
            dimension_semantics=("parallel", "parallel"),
            vmem_limit_bytes=vmem_limit),
    )(w_sm, q2, k2, v2, klen)

    # Splitting the last dim is a free (metadata-only) reshape.
    return out_flat.reshape(N, L, H, M)


def mixture_linear_attention_ref(queries, keys, values, key_lengths, weights,
                                 eps=1e-6):
    """Pure-JAX reference mirroring the PyTorch forward exactly (f32)."""
    Q = _elu_plus_one(queries)
    K = _elu_plus_one(keys)
    K = K * key_lengths[:, :, None, None, None]
    KV = jnp.einsum('nsqhd,nshm->nqhmd', K, values)
    W = jax.nn.softmax(weights, axis=-1)
    Z = 1.0 / (jnp.einsum('nlqhd,nqhd->nlqh', Q, K.sum(axis=1)) + eps)
    V = jnp.einsum('nlqhd,nqhmd,nlqh->nlqhm', Q, KV, Z)
    return jnp.einsum('q,nlqhm->nlhm', W, V)


if __name__ == "__main__":
    # Small, module-consistent shapes.
    N, L, S = 2, 8, 8          # batch, query length, key length
    C, H, D, M = 3, 2, 32, 32  # n_components, heads, query dim, value dim
    eps = 1e-6

    key = jax.random.PRNGKey(0)
    kq, kk, kv, kw = jax.random.split(key, 4)

    queries = jax.random.normal(kq, (N, L, C, H, D), dtype=jnp.float32)
    keys = jax.random.normal(kk, (N, S, C, H, D), dtype=jnp.float32)
    values = jax.random.normal(kv, (N, S, H, M), dtype=jnp.float32)
    # Deterministic parameter init matching torch.nn.init.uniform_(-0.25, 0.25).
    weights = jax.random.uniform(kw, (C,), minval=-0.25, maxval=0.25,
                                 dtype=jnp.float32)
    # key_lengths.float_matrix: 1.0 for valid key positions, 0.0 for padding.
    lengths = jnp.array([S, S - 2], dtype=jnp.int32)
    key_lengths = (jnp.arange(S)[None, :] < lengths[:, None]).astype(jnp.float32)

    out = mixture_linear_attention(queries, keys, values, key_lengths, weights,
                                   eps=eps)
    out = jax.block_until_ready(out)

    ref = mixture_linear_attention_ref(queries, keys, values, key_lengths,
                                       weights, eps=eps)
    assert out.shape == (N, L, H, M)
    # Tolerance accounts for bf16 MXU operands (f32 accumulation) and the EUP
    # approximate reciprocal in Z.
    assert jnp.allclose(out, ref, atol=3e-2, rtol=3e-2), (
        f"max abs err {jnp.max(jnp.abs(out - ref))}")

    print("KERNEL_OK")
</pallas_src>

<mosaic_0001>
module attributes {stable_mosaic.version = 11 : i64} {
  func.func @_mixture_kernel(%arg0: i32, %arg1: i32, %arg2: memref<3xf32, #tpu.memory_space<smem>>, %arg3: memref<1x8x192xf32, #tpu.memory_space<vmem>>, %arg4: memref<1x8x192xf32, #tpu.memory_space<vmem>>, %arg5: memref<1x8x64xf32, #tpu.memory_space<vmem>>, %arg6: memref<1x8x1xf32, #tpu.memory_space<vmem>>, %arg7: memref<1x8x64xf32, #tpu.memory_space<vmem>>) attributes {dimension_semantics = [#tpu.dimension_semantics<parallel>, #tpu.dimension_semantics<parallel>], iteration_bounds = array<i64: 2, 1>, scalar_prefetch = 1 : i64, scratch_operands = 0 : i64, tpu.core_type = #tpu.core_type<tc>, window_params = [{transform_indices = @transform_0, window_bounds = array<i64: 1, 8, 192>}, {transform_indices = @transform_1, window_bounds = array<i64: 1, 8, 192>}, {transform_indices = @transform_2, window_bounds = array<i64: 1, 8, 64>}, {transform_indices = @transform_3, window_bounds = array<i64: 1, 8, 1>}, {transform_indices = @transform_4, window_bounds = array<i64: 1, 8, 64>}]} {
    %c0 = arith.constant 0 : index
    %c0_0 = arith.constant 0 : index
    %c0_1 = arith.constant 0 : index
    %0 = vector.load %arg6[%c0, %c0_0, %c0_1] : memref<1x8x1xf32, #tpu.memory_space<vmem>>, vector<1x8x1xf32>
    %1 = vector.shape_cast %0 : vector<1x8x1xf32> to vector<8x1xf32>
    %c0_2 = arith.constant 0 : index
    %c0_3 = arith.constant 0 : index
    %c0_4 = arith.constant 0 : index
    %2 = vector.load %arg4[%c0_2, %c0_3, %c0_4] : memref<1x8x192xf32, #tpu.memory_space<vmem>>, vector<1x8x192xf32>
    %3 = vector.shape_cast %2 : vector<1x8x192xf32> to vector<8x192xf32>
    %cst = arith.constant 0.000000e+00 : f32
    %4 = vector.broadcast %cst : f32 to vector<8x192xf32>
    %5 = arith.cmpf ogt, %3, %4 : vector<8x192xf32>
    %cst_5 = arith.constant 1.000000e+00 : f32
    %6 = vector.broadcast %cst_5 : f32 to vector<8x192xf32>
    %7 = arith.addf %3, %6 : vector<8x192xf32>
    %cst_6 = arith.constant 0.000000e+00 : f32
    %8 = vector.broadcast %cst_6 : f32 to vector<8x192xf32>
    %9 = arith.minimumf %3, %8 : vector<8x192xf32>
    %10 = math.exp %9 : vector<8x192xf32>
    %11 = arith.select %5, %7, %10 : vector<8x192xi1>, vector<8x192xf32>
    %12 = vector.broadcast %1 : vector<8x1xf32> to vector<8x192xf32>
    %13 = arith.mulf %11, %12 : vector<8x192xf32>
    %c0_7 = arith.constant 0 : index
    %c0_8 = arith.constant 0 : index
    %c0_9 = arith.constant 0 : index
    %14 = vector.load %arg3[%c0_7, %c0_8, %c0_9] : memref<1x8x192xf32, #tpu.memory_space<vmem>>, vector<1x8x192xf32>
    %15 = vector.shape_cast %14 : vector<1x8x192xf32> to vector<8x192xf32>
    %cst_10 = arith.constant 0.000000e+00 : f32
    %16 = vector.broadcast %cst_10 : f32 to vector<8x192xf32>
    %17 = arith.cmpf ogt, %15, %16 : vector<8x192xf32>
    %cst_11 = arith.constant 1.000000e+00 : f32
    %18 = vector.broadcast %cst_11 : f32 to vector<8x192xf32>
    %19 = arith.addf %15, %18 : vector<8x192xf32>
    %cst_12 = arith.constant 0.000000e+00 : f32
    %20 = vector.broadcast %cst_12 : f32 to vector<8x192xf32>
    %21 = arith.minimumf %15, %20 : vector<8x192xf32>
    %22 = math.exp %21 : vector<8x192xf32>
    %23 = arith.select %17, %19, %22 : vector<8x192xi1>, vector<8x192xf32>
    %24 = vector.extract_strided_slice %13 {offsets = [0, 0], sizes = [8, 32], strides = [1, 1]} : vector<8x192xf32> to vector<8x32xf32>
    %25 = vector.extract_strided_slice %13 {offsets = [0, 64], sizes = [8, 32], strides = [1, 1]} : vector<8x192xf32> to vector<8x32xf32>
    %26 = vector.extract_strided_slice %13 {offsets = [0, 128], sizes = [8, 32], strides = [1, 1]} : vector<8x192xf32> to vector<8x32xf32>
    %27 = tpu.concatenate %24, %25, %26 in 1 : vector<8x32xf32>, vector<8x32xf32>, vector<8x32xf32> -> vector<8x96xf32>
    %28 = vector.extract_strided_slice %23 {offsets = [0, 0], sizes = [8, 32], strides = [1, 1]} : vector<8x192xf32> to vector<8x32xf32>
    %29 = vector.extract_strided_slice %23 {offsets = [0, 64], sizes = [8, 32], strides = [1, 1]} : vector<8x192xf32> to vector<8x32xf32>
    %30 = vector.extract_strided_slice %23 {offsets = [0, 128], sizes = [8, 32], strides = [1, 1]} : vector<8x192xf32> to vector<8x32xf32>
    %31 = tpu.concatenate %28, %29, %30 in 1 : vector<8x32xf32>, vector<8x32xf32>, vector<8x32xf32> -> vector<8x96xf32>
    %c0_13 = arith.constant 0 : index
    %c0_14 = arith.constant 0 : index
    %c0_15 = arith.constant 0 : index
    %32 = vector.load %arg5[%c0_13, %c0_14, %c0_15] : memref<1x8x64xf32, #tpu.memory_space<vmem>>, vector<1x8x32xf32>
    %33 = vector.shape_cast %32 : vector<1x8x32xf32> to vector<8x32xf32>
    %34 = arith.truncf %27 : vector<8x96xf32> to vector<8x96xbf16>
    %35 = arith.truncf %33 : vector<8x32xf32> to vector<8x32xbf16>
    %cst_16 = arith.constant dense<0.000000e+00> : vector<96x32xf32>
    %36 = tpu.matmul %34, %35, %cst_16 {dimension_numbers = #tpu.dot_dimension_numbers<[0], [0], [1], [1], [0, 1, 1, 1], [], []>} : vector<8x96xbf16>, vector<8x32xbf16>, vector<96x32xf32> -> vector<96x32xf32>
    %cst_17 = arith.constant dense<0.000000e+00> : vector<96xf32>
    %37 = vector.multi_reduction <add>, %27, %cst_17 [0] : vector<8x96xf32> to vector<96xf32>
    %38 = vector.shape_cast %37 : vector<96xf32> to vector<1x96xf32>
    %39 = vector.broadcast %38 : vector<1x96xf32> to vector<8x96xf32>
    %40 = arith.mulf %31, %39 : vector<8x96xf32>
    %41 = vector.extract_strided_slice %40 {offsets = [0, 0], sizes = [8, 32], strides = [1, 1]} : vector<8x96xf32> to vector<8x32xf32>
    %cst_18 = arith.constant dense<0.000000e+00> : vector<8xf32>
    %42 = vector.multi_reduction <add>, %41, %cst_18 [1] : vector<8x32xf32> to vector<8xf32>
    %43 = vector.shape_cast %42 : vector<8xf32> to vector<8x1xf32>
    %cst_19 = arith.constant 9.99999997E-7 : f32
    %44 = vector.broadcast %cst_19 : f32 to vector<8x1xf32>
    %45 = arith.addf %43, %44 : vector<8x1xf32>
    %46 = tpu.reciprocal %45 {approx = true} : vector<8x1xf32> -> vector<8x1xf32>
    %47 = vector.extract_strided_slice %31 {offsets = [0, 0], sizes = [8, 32], strides = [1, 1]} : vector<8x96xf32> to vector<8x32xf32>
    %c0_20 = arith.constant 0 : index
    %48 = memref.load %arg2[%c0_20] : memref<3xf32, #tpu.memory_space<smem>>
    %49 = vector.broadcast %48 : f32 to vector<8x1xf32>
    %50 = arith.mulf %49, %46 : vector<8x1xf32>
    %51 = vector.broadcast %50 : vector<8x1xf32> to vector<8x32xf32>
    %52 = arith.mulf %47, %51 : vector<8x32xf32>
    %53 = vector.extract_strided_slice %40 {offsets = [0, 32], sizes = [8, 32], strides = [1, 1]} : vector<8x96xf32> to vector<8x32xf32>
    %cst_21 = arith.constant dense<0.000000e+00> : vector<8xf32>
    %54 = vector.multi_reduction <add>, %53, %cst_21 [1] : vector<8x32xf32> to vector<8xf32>
    %55 = vector.shape_cast %54 : vector<8xf32> to vector<8x1xf32>
    %cst_22 = arith.constant 9.99999997E-7 : f32
    %56 = vector.broadcast %cst_22 : f32 to vector<8x1xf32>
    %57 = arith.addf %55, %56 : vector<8x1xf32>
    %58 = tpu.reciprocal %57 {approx = true} : vector<8x1xf32> -> vector<8x1xf32>
    %59 = vector.extract_strided_slice %31 {offsets = [0, 32], sizes = [8, 32], strides = [1, 1]} : vector<8x96xf32> to vector<8x32xf32>
    %c1 = arith.constant 1 : index
    %60 = memref.load %arg2[%c1] : memref<3xf32, #tpu.memory_space<smem>>
    %61 = vector.broadcast %60 : f32 to vector<8x1xf32>
    %62 = arith.mulf %61, %58 : vector<8x1xf32>
    %63 = vector.broadcast %62 : vector<8x1xf32> to vector<8x32xf32>
    %64 = arith.mulf %59, %63 : vector<8x32xf32>
    %65 = vector.extract_strided_slice %40 {offsets = [0, 64], sizes = [8, 32], strides = [1, 1]} : vector<8x96xf32> to vector<8x32xf32>
    %cst_23 = arith.constant dense<0.000000e+00> : vector<8xf32>
    %66 = vector.multi_reduction <add>, %65, %cst_23 [1] : vector<8x32xf32> to vector<8xf32>
    %67 = vector.shape_cast %66 : vector<8xf32> to vector<8x1xf32>
    %cst_24 = arith.constant 9.99999997E-7 : f32
    %68 = vector.broadcast %cst_24 : f32 to vector<8x1xf32>
    %69 = arith.addf %67, %68 : vector<8x1xf32>
    %70 = tpu.reciprocal %69 {approx = true} : vector<8x1xf32> -> vector<8x1xf32>
    %71 = vector.extract_strided_slice %31 {offsets = [0, 64], sizes = [8, 32], strides = [1, 1]} : vector<8x96xf32> to vector<8x32xf32>
    %c2 = arith.constant 2 : index
    %72 = memref.load %arg2[%c2] : memref<3xf32, #tpu.memory_space<smem>>
    %73 = vector.broadcast %72 : f32 to vector<8x1xf32>
    %74 = arith.mulf %73, %70 : vector<8x1xf32>
    %75 = vector.broadcast %74 : vector<8x1xf32> to vector<8x32xf32>
    %76 = arith.mulf %71, %75 : vector<8x32xf32>
    %77 = tpu.concatenate %52, %64, %76 in 1 : vector<8x32xf32>, vector<8x32xf32>, vector<8x32xf32> -> vector<8x96xf32>
    %78 = arith.truncf %77 : vector<8x96xf32> to vector<8x96xbf16>
    %79 = arith.truncf %36 : vector<96x32xf32> to vector<96x32xbf16>
    %cst_25 = arith.constant dense<0.000000e+00> : vector<8x32xf32>
    %80 = tpu.matmul %78, %79, %cst_25 {dimension_numbers = #tpu.dot_dimension_numbers<[1], [0], [0], [1], [0, 0, 1, 1], [], []>} : vector<8x96xbf16>, vector<96x32xbf16>, vector<8x32xf32> -> vector<8x32xf32>
    %81 = vector.extract_strided_slice %13 {offsets = [0, 32], sizes = [8, 32], strides = [1, 1]} : vector<8x192xf32> to vector<8x32xf32>
    %82 = vector.extract_strided_slice %13 {offsets = [0, 96], sizes = [8, 32], strides = [1, 1]} : vector<8x192xf32> to vector<8x32xf32>
    %83 = vector.extract_strided_slice %13 {offsets = [0, 160], sizes = [8, 32], strides = [1, 1]} : vector<8x192xf32> to vector<8x32xf32>
    %84 = tpu.concatenate %81, %82, %83 in 1 : vector<8x32xf32>, vector<8x32xf32>, vector<8x32xf32> -> vector<8x96xf32>
    %85 = vector.extract_strided_slice %23 {offsets = [0, 32], sizes = [8, 32], strides = [1, 1]} : vector<8x192xf32> to vector<8x32xf32>
    %86 = vector.extract_strided_slice %23 {offsets = [0, 96], sizes = [8, 32], strides = [1, 1]} : vector<8x192xf32> to vector<8x32xf32>
    %87 = vector.extract_strided_slice %23 {offsets = [0, 160], sizes = [8, 32], strides = [1, 1]} : vector<8x192xf32> to vector<8x32xf32>
    %88 = tpu.concatenate %85, %86, %87 in 1 : vector<8x32xf32>, vector<8x32xf32>, vector<8x32xf32> -> vector<8x96xf32>
    %c0_26 = arith.constant 0 : index
    %c0_27 = arith.constant 0 : index
    %c32 = arith.constant 32 : index
    %89 = vector.load %arg5[%c0_26, %c0_27, %c32] : memref<1x8x64xf32, #tpu.memory_space<vmem>>, vector<1x8x32xf32>
    %90 = vector.shape_cast %89 : vector<1x8x32xf32> to vector<8x32xf32>
    %91 = arith.truncf %84 : vector<8x96xf32> to vector<8x96xbf16>
    %92 = arith.truncf %90 : vector<8x32xf32> to vector<8x32xbf16>
    %cst_28 = arith.constant dense<0.000000e+00> : vector<96x32xf32>
    %93 = tpu.matmul %91, %92, %cst_28 {dimension_numbers = #tpu.dot_dimension_numbers<[0], [0], [1], [1], [0, 1, 1, 1], [], []>} : vector<8x96xbf16>, vector<8x32xbf16>, vector<96x32xf32> -> vector<96x32xf32>
    %cst_29 = arith.constant dense<0.000000e+00> : vector<96xf32>
    %94 = vector.multi_reduction <add>, %84, %cst_29 [0] : vector<8x96xf32> to vector<96xf32>
    %95 = vector.shape_cast %94 : vector<96xf32> to vector<1x96xf32>
    %96 = vector.broadcast %95 : vector<1x96xf32> to vector<8x96xf32>
    %97 = arith.mulf %88, %96 : vector<8x96xf32>
    %98 = vector.extract_strided_slice %97 {offsets = [0, 0], sizes = [8, 32], strides = [1, 1]} : vector<8x96xf32> to vector<8x32xf32>
    %cst_30 = arith.constant dense<0.000000e+00> : vector<8xf32>
    %99 = vector.multi_reduction <add>, %98, %cst_30 [1] : vector<8x32xf32> to vector<8xf32>
    %100 = vector.shape_cast %99 : vector<8xf32> to vector<8x1xf32>
    %cst_31 = arith.constant 9.99999997E-7 : f32
    %101 = vector.broadcast %cst_31 : f32 to vector<8x1xf32>
    %102 = arith.addf %100, %101 : vector<8x1xf32>
    %103 = tpu.reciprocal %102 {approx = true} : vector<8x1xf32> -> vector<8x1xf32>
    %104 = vector.extract_strided_slice %88 {offsets = [0, 0], sizes = [8, 32], strides = [1, 1]} : vector<8x96xf32> to vector<8x32xf32>
    %c0_32 = arith.constant 0 : index
    %105 = memref.load %arg2[%c0_32] : memref<3xf32, #tpu.memory_space<smem>>
    %106 = vector.broadcast %105 : f32 to vector<8x1xf32>
    %107 = arith.mulf %106, %103 : vector<8x1xf32>
    %108 = vector.broadcast %107 : vector<8x1xf32> to vector<8x32xf32>
    %109 = arith.mulf %104, %108 : vector<8x32xf32>
    %110 = vector.extract_strided_slice %97 {offsets = [0, 32], sizes = [8, 32], strides = [1, 1]} : vector<8x96xf32> to vector<8x32xf32>
    %cst_33 = arith.constant dense<0.000000e+00> : vector<8xf32>
    %111 = vector.multi_reduction <add>, %110, %cst_33 [1] : vector<8x32xf32> to vector<8xf32>
    %112 = vector.shape_cast %111 : vector<8xf32> to vector<8x1xf32>
    %cst_34 = arith.constant 9.99999997E-7 : f32
    %113 = vector.broadcast %cst_34 : f32 to vector<8x1xf32>
    %114 = arith.addf %112, %113 : vector<8x1xf32>
    %115 = tpu.reciprocal %114 {approx = true} : vector<8x1xf32> -> vector<8x1xf32>
    %116 = vector.extract_strided_slice %88 {offsets = [0, 32], sizes = [8, 32], strides = [1, 1]} : vector<8x96xf32> to vector<8x32xf32>
    %c1_35 = arith.constant 1 : index
    %117 = memref.load %arg2[%c1_35] : memref<3xf32, #tpu.memory_space<smem>>
    %118 = vector.broadcast %117 : f32 to vector<8x1xf32>
    %119 = arith.mulf %118, %115 : vector<8x1xf32>
    %120 = vector.broadcast %119 : vector<8x1xf32> to vector<8x32xf32>
    %121 = arith.mulf %116, %120 : vector<8x32xf32>
    %122 = vector.extract_strided_slice %97 {offsets = [0, 64], sizes = [8, 32], strides = [1, 1]} : vector<8x96xf32> to vector<8x32xf32>
    %cst_36 = arith.constant dense<0.000000e+00> : vector<8xf32>
    %123 = vector.multi_reduction <add>, %122, %cst_36 [1] : vector<8x32xf32> to vector<8xf32>
    %124 = vector.shape_cast %123 : vector<8xf32> to vector<8x1xf32>
    %cst_37 = arith.constant 9.99999997E-7 : f32
    %125 = vector.broadcast %cst_37 : f32 to vector<8x1xf32>
    %126 = arith.addf %124, %125 : vector<8x1xf32>
    %127 = tpu.reciprocal %126 {approx = true} : vector<8x1xf32> -> vector<8x1xf32>
    %128 = vector.extract_strided_slice %88 {offsets = [0, 64], sizes = [8, 32], strides = [1, 1]} : vector<8x96xf32> to vector<8x32xf32>
    %c2_38 = arith.constant 2 : index
    %129 = memref.load %arg2[%c2_38] : memref<3xf32, #tpu.memory_space<smem>>
    %130 = vector.broadcast %129 : f32 to vector<8x1xf32>
    %131 = arith.mulf %130, %127 : vector<8x1xf32>
    %132 = vector.broadcast %131 : vector<8x1xf32> to vector<8x32xf32>
    %133 = arith.mulf %128, %132 : vector<8x32xf32>
    %134 = tpu.concatenate %109, %121, %133 in 1 : vector<8x32xf32>, vector<8x32xf32>, vector<8x32xf32> -> vector<8x96xf32>
    %135 = arith.truncf %134 : vector<8x96xf32> to vector<8x96xbf16>
    %136 = arith.truncf %93 : vector<96x32xf32> to vector<96x32xbf16>
    %cst_39 = arith.constant dense<0.000000e+00> : vector<8x32xf32>
    %137 = tpu.matmul %135, %136, %cst_39 {dimension_numbers = #tpu.dot_dimension_numbers<[1], [0], [0], [1], [0, 0, 1, 1], [], []>} : vector<8x96xbf16>, vector<96x32xbf16>, vector<8x32xf32> -> vector<8x32xf32>
    %138 = tpu.concatenate %80, %137 in 1 : vector<8x32xf32>, vector<8x32xf32> -> vector<8x64xf32>
    %c0_40 = arith.constant 0 : index
    %c0_41 = arith.constant 0 : index
    %c0_42 = arith.constant 0 : index
    %139 = vector.load %arg7[%c0_40, %c0_41, %c0_42] : memref<1x8x64xf32, #tpu.memory_space<vmem>>, vector<1x8x64xf32>
    %140 = vector.shape_cast %139 : vector<1x8x64xf32> to vector<8x64xf32>
    %141 = vector.shape_cast %138 : vector<8x64xf32> to vector<1x8x64xf32>
    tpu.vector_store %arg7[%c0_40, %c0_41, %c0_42], %141 {strides = array<i32>} : memref<1x8x64xf32, #tpu.memory_space<vmem>>, vector<1x8x64xf32>,
    return
  }
  func.func @transform_0(%arg0: i32, %arg1: i32, %arg2: memref<3xf32, #tpu.memory_space<smem>>) -> (i32, i32, i32) {
    %c0_i32 = arith.constant 0 : i32
    %c0_i32_0 = arith.constant 0 : i32
    return %arg0, %arg1, %c0_i32 : i32, i32, i32
  }
  func.func @transform_1(%arg0: i32, %arg1: i32, %arg2: memref<3xf32, #tpu.memory_space<smem>>) -> (i32, i32, i32) {
    %c0_i32 = arith.constant 0 : i32
    %c0_i32_0 = arith.constant 0 : i32
    %c0_i32_1 = arith.constant 0 : i32
    return %arg0, %c0_i32, %c0_i32_0 : i32, i32, i32
  }
  func.func @transform_2(%arg0: i32, %arg1: i32, %arg2: memref<3xf32, #tpu.memory_space<smem>>) -> (i32, i32, i32) {
    %c0_i32 = arith.constant 0 : i32
    %c0_i32_0 = arith.constant 0 : i32
    %c0_i32_1 = arith.constant 0 : i32
    return %arg0, %c0_i32, %c0_i32_0 : i32, i32, i32
  }
  func.func @transform_3(%arg0: i32, %arg1: i32, %arg2: memref<3xf32, #tpu.memory_space<smem>>) -> (i32, i32, i32) {
    %c0_i32 = arith.constant 0 : i32
    %c0_i32_0 = arith.constant 0 : i32
    %c0_i32_1 = arith.constant 0 : i32
    return %arg0, %c0_i32, %c0_i32_0 : i32, i32, i32
  }
  func.func @transform_4(%arg0: i32, %arg1: i32, %arg2: memref<3xf32, #tpu.memory_space<smem>>) -> (i32, i32, i32) {
    %c0_i32 = arith.constant 0 : i32
    %c0_i32_0 = arith.constant 0 : i32
    return %arg0, %arg1, %c0_i32 : i32, i32, i32
  }
}

</mosaic_0001>

<bundles_post_ra>
// kernel: tpu_custom_call.1
= control target key start
LH: loop header
LB: loop body
LE: loop exit
PB: predicated region body
PF: predicated region fallthrough
CT: control target
= control target key end

     0   :  { %s1725_s0 = inlined_call_operand.vmem [shape: f32[3], index: 0, kind: input, shape index: {}]   ;;  %s1726_s1 = inlined_call_operand.hbm [shape: f32[2,8,192], index: 1, kind: input, shape index: {}]   ;;  %s1727_s2 = inlined_call_operand.hbm [shape: f32[2,8,192], index: 2, kind: input, shape index: {}]   ;;  %s1728_s3 = inlined_call_operand.vmem [shape: f32[2,8,64], index: 3, kind: input, shape index: {}]   ;;  %s1729_s4 = inlined_call_operand.vmem [shape: f32[2,8,1], index: 4, kind: input, shape index: {}]   ;;  %s1730_s5 = inlined_call_operand.hbm [shape: f32[2,8,64], index: 5, kind: output, shape index: {}]  }
   0x1   :  { %s10_s20 = sshll.u32 %s1725_s0, 4  ;;  %s11_s20 = int_to_ptr.vmem [resolvable:$true] %s10_s20 }
   0x2   :  { %s1187_s21 = scalar_lea.vmem %s11_s20, 16  ;;  %p1192_p1 = scmp.lt.s32.totalorder %s11_s20, %s11_s20 }
   0x3   :  { %p1188_p0 = scmp.ne.s32.totalorder %s11_s20, %s1187_s21  ;;  %p1193_p2 = scmp.lt.s32.totalorder %s1187_s21, %s1187_s21 }
   0x5   :  { %p1194_p3 = por %p1193_p2, %p1192_p1 }
   0x7   :  { %p1195_p4 = pnand %p1194_p3, %p1188_p0 }
   0x9   :  { %1198 = shalt.err (!%p1195_p4)  }
   0xa   :  { %s1349_s22 = smov [#allocation3]  }
   0xb   :  { %13 = dma.vmem_to_smem %s11_s20, 16, %s1349_s22, [#allocation2] }
   0xc   :  { %1311 = dma.done.wait [#allocation2], 16 }
   0xd   :  { %1312 = vsyncadd [#allocation2], 4294967280 }
   0xe   :  { %15 = sfence }
   0xf   :  { %16 = vsyncpa [#allocation5], 0 }
  0x10   :  { %18 = vsyncpa [#allocation5 + $0x1], 0 }
  0x11   :  { %19 = vsyncpa [#allocation8], 0 }
  0x12   :  { %21 = vsyncpa [#allocation8 + $0x1], 0 }
  0x13   :  { %22 = vsyncpa [#allocation6], 0 }
  0x14   :  { %24 = vsyncpa [#allocation6 + $0x1], 0  ;;  %s1392_s0 = smov 0   ;;  %s1394_s23 = smov 0  }
  0x15   :  { %s1396_s24 = smov 0   ;;  %s1398_s25 = smov 0  }
  0x16   :  { %s1400_s26 = smov 0   ;;  %s1402_s27 = smov 0  }
  0x17 LB: > { %s964_s28 = sadd.s32 4294967295, %s1347_s27   ;;  %s965_s29 = sadd.s32 4294967294, %s1347_s27   ;;  %s1347_s27 = sphi %s1402_s27, %s30_s27   ;;  %s1343_s26 = sphi %s1400_s26, %s1750_s26   ;;  %s1339_s25 = sphi %s1398_s25, %s1749_s25   ;;  %s1335_s24 = sphi %s1396_s24, %s1748_s24   ;;  %s1331_s23 = sphi %s1394_s23, %s1747_s23   ;;  %s1327_s0 = sphi %s1392_s0, %s1746_s0  }
  0x18   : > { %s42_s30 = sadd.s32 1, %s1343_s26  ;;  %s51_s6 = sadd.s32 1, %s1335_s24 }
  0x19   : > { %p44_p5 = scmp.ge.s32.totalorder %s42_s30, 2  ;;  %p58_p6 = scmp.ne.s32.totalorder %s1335_s24, %s1331_s23 }
  0x1a   : > { %p59_p7 = scmp.eq.s32.totalorder %s1347_s27, 0  ;;  %p64_p8 = scmp.ne.s32.totalorder %s1331_s23, %s1327_s0 }
  0x1b   : > { %s1752_s30 = smov (%p44_p5, %s42_s30), 0  ;;  %p65_p10 = scmp.eq.s32.totalorder %s964_s28, 0 }
  0x1c   : > { %p1433_p9 = por %p59_p7, %p58_p6  ;;  %s46_s8 = ssub.s32 %s1343_s26, %s1752_s30 }
  0x1d   : > { %p168_p11 = scmp.eq.s32.totalorder %s964_s28, 1  ;;  %p49_p12 = scmp.eq.s32.totalorder %s46_s8, 0 }
  0x1e   : > { %p1439_p13 = por %p65_p10, %p64_p8  ;;  %p174_p1 = scmp.eq.s32.totalorder %s965_s29, 1 }
  0x1f   : > { %p1443_p0 = por %p168_p11, %p58_p6  ;;  %p1109_p4 = scmp.lt.s32.totalorder %s1347_s27, 2 }
  0x20   : > { %s1734_s9 = scalar_select %p1439_p13, 1, 0 }
  0x21   : > { %s1735_s10 = scalar_select %p1443_p0, 1, 0 }
  0x22   : > { %s1448_s11 = scalar_select %p49_p12, %s1335_s24, %s51_s6  }
  0x23   : > { %p1450_p2 = por %p174_p1, %p64_p8  ;;  %s1457_s13 = sand.u32 1, %s1335_s24  }
  0x24   : > { %s968_s14 = sshll.u32 %s1457_s13, 4  ;;  %s1000_s15 = sshll.u32 %s1343_s26, 8 }
  0x25   : > { %s1736_s12 = scalar_select %p1450_p2, 1, 0 }
  0x26   : > { %s1466_s18 = scalar_lea.hbm %s1726_s1, %s1000_s15  ;;  %s198_s19 = scalar_lea.vmem [#allocation4], %s968_s14 }
  0x27   : > { %s208_s20 = sshll.u32 %s198_s19, 4  ;;  %p1474_p5 = pnand %p1109_p4, %p1433_p9  ;;  %s1470_s20 = int_to_ptr.vmem [resolvable:$true] %s208_s20 }
  0x28   : > { %s195_s22 = scalar_lea.sflag [#allocation5], %s1457_s13  ;;  %s1199_s28 = scalar_lea.hbm %s1466_s18, 256 }
  0x29   : > { %p1200_p8 = scmp.ne.s32.totalorder %s1466_s18, %s1199_s28  ;;  %p1201_p10 = pneg %p1474_p5 }
  0x2a   : > { %s1204_s7 = scalar_lea.hbm %s1726_s1, 512  ;;  %p1205_p9 = scmp.lt.u32.totalorder %s1466_s18, %s1726_s1 }
  0x2b   : > { %p1202_p11 = pnand %p1201_p10, %p1200_p8  ;;  %p1206_p1 = scmp.lt.u32.totalorder %s1204_s7, %s1199_s28 }
  0x2c   : > { %p1208_p3 = scmp.lt.u32.totalorder %s1199_s28, %s1466_s18 }
  0x2d   : > { %p1203_p12 = pneg %p1202_p11  ;;  %p1207_p4 = por %p1206_p1, %p1205_p9 }
  0x2f   : > { %p1209_p6 = por %p1208_p3, %p1207_p4 }
  0x31   : > { %p1210_p7 = pnand %p1209_p6, %p1203_p12 }
  0x33   : > { %1213 = shalt.err (!%p1210_p7)
}
  0x34   : > { %s1214_s17 = scalar_lea.vmem %s1470_s20, 256  ;;  %s1350_s19 = smov [#allocation4]  }
  0x35   : > { %p1215_p8 = scmp.ne.s32.totalorder %s1470_s20, %s1214_s17  ;;  %s1219_s29 = sshll.u32 %s1350_s19, 4  ;;  %s1220_s29 = int_to_ptr.vmem [resolvable:$false] %s1219_s29 }
  0x36   : > { %s1221_s6 = scalar_lea.vmem %s1220_s29, 512  ;;  %p1222_p0 = scmp.lt.s32.totalorder %s1470_s20, %s1220_s29 }
  0x37   : > { %p1217_p11 = pnand %p1215_p8, %p1201_p10  ;;  %p1223_p9 = scmp.lt.s32.totalorder %s1221_s6, %s1214_s17 }
  0x39   : > { %p1218_p2 = pneg %p1217_p11  ;;  %p1224_p1 = por %p1223_p9, %p1222_p0 }
  0x3b   : > { %p1225_p3 = pnand %p1224_p1, %p1218_p2 }
  0x3d   : > { %1228 = shalt.err (!%p1225_p3)
}
  0x3e   : > { %1101 = dma.hbm_to_vmem [thread:$0]  (!%p1474_p5), %s1466_s18, 256, %s1470_s20, %s195_s22  }
  0x3f   : > { %p1738_p6 = scmp.lt.s32.totalorder %s1347_s27, 3  ;;  %p1739_p7 = scmp.ge.s32.totalorder %s1347_s27, 1 }
  0x40   : > { %s1519_s16 = scalar_lea.hbm %s1727_s2, %s1000_s15  ;;  %s219_s17 = scalar_lea.vmem [#allocation7], %s968_s14 }
  0x41   : > { %p1510_p12 = pnand %p1739_p7, %p1738_p6  ;;  %s227_s19 = sshll.u32 %s219_s17, 4  ;;  %s228_s19 = int_to_ptr.vmem [resolvable:$true] %s227_s19 }
  0x42   : > { %s216_s18 = scalar_lea.sflag [#allocation8], %s1457_s13  ;;  %s1229_s20 = scalar_lea.hbm %s1519_s16, 256 }
  0x43   : > { %s1740_s28 = scalar_select %p1510_p12, 1, 0 }
  0x44   : > { %p1230_p0 = scmp.ne.s32.totalorder %s1519_s16, %s1229_s20  ;;  %s1234_s15 = scalar_lea.hbm %s1727_s2, 512 }
  0x45   : > { %p1235_p8 = scmp.lt.u32.totalorder %s1519_s16, %s1727_s2  ;;  %p1236_p11 = scmp.lt.u32.totalorder %s1234_s15, %s1229_s20 }
  0x46   : > { %p1232_p2 = pnand %p1230_p0, %p1201_p10  ;;  %p1238_p1 = scmp.lt.u32.totalorder %s1229_s20, %s1519_s16 }
  0x47   : > { %p1237_p9 = por %p1236_p11, %p1235_p8 }
  0x48   : > { %p1233_p4 = pneg %p1232_p2 }
  0x49   : > { %p1239_p3 = por %p1238_p1, %p1237_p9 }
  0x4b   : > { %p1240_p6 = pnand %p1239_p3, %p1233_p4 }
  0x4d   : > { %1243 = shalt.err (!%p1240_p6)
}
  0x4e   : > { %s1244_s13 = scalar_lea.vmem %s228_s19, 256  ;;  %s1351_s14 = smov [#allocation7]  }
  0x4f   : > { %p1245_p7 = scmp.ne.s32.totalorder %s228_s19, %s1244_s13  ;;  %s1249_s8 = sshll.u32 %s1351_s14, 4  ;;  %s1250_s8 = int_to_ptr.vmem [resolvable:$false] %s1249_s8 }
  0x50   : > { %s1251_s17 = scalar_lea.vmem %s1250_s8, 512  ;;  %p1252_p13 = scmp.lt.s32.totalorder %s228_s19, %s1250_s8 }
  0x51   : > { %p1247_p0 = pnand %p1245_p7, %p1201_p10  ;;  %p1253_p12 = scmp.lt.s32.totalorder %s1251_s17, %s1244_s13 }
  0x53   : > { %p1248_p2 = pneg %p1247_p0  ;;  %p1254_p8 = por %p1253_p12, %p1252_p13 }
  0x55   : > { %p1255_p11 = pnand %p1254_p8, %p1248_p2 }
  0x57   : > { %1258 = shalt.err (!%p1255_p11)
}
  0x58   : > { %1104 = dma.hbm_to_vmem [thread:$0]  (!%p1474_p5), %s1519_s16, 256, %s228_s19, %s216_s18  }
  0x59   : > { %p1741_p4 = scmp.ne.s32.totalorder %s1740_s28, 0 }
  0x5a   : > { %s1546_s20 = sand.u32 (!%p1741_p4), 1, %s1331_s23   ;;  %p1742_p13 = scmp.ne.s32.totalorder (!%p1741_p4), %s1734_s9, 0 }
  0x5b   : > { %250 = sbr.rel (%p1741_p4) target bundleno = 1153 (0x481), region = 36  ;;  %s975_s22 = sshll.u32 (!%p1741_p4), %s1546_s20, 4 }
  0x5c   : > { %s253_s29 = scalar_lea.sflag (!%p1741_p4), [#allocation5], %s1546_s20  ;;  %s1550_s15 = scalar_lea.vmem (!%p1741_p4), [#allocation4], %s975_s22 }
  0x62   : > { %1314 = dma.done.wait (%p1742_p13), %s253_s29, 256  }
  0x63   : > { %1316 = vsyncadd (%p1742_p13), %s253_s29, 4294967040  ;;  %s262_s21 = scalar_lea.sflag [#allocation8], %s1546_s20  ;;  %s265_s28 = scalar_lea.vmem [#allocation7], %s975_s22 }
  0x64   : > { %1318 = dma.done.wait (%p1742_p13), %s262_s21, 256  }
  0x65   : > { %1320 = vsyncadd (%p1742_p13), %s262_s21, 4294967040  ;;  %p303_p5 = scmp.lt.s32.totalorder %s1339_s25, 1  ;;  %v1352_v0 = vmov 0   ;;  %v313_v2 = vld [vmem:[%s265_s28] sm:$0xff]  ;;  %v314_v3 = vld [vmem:[%s265_s28 + $0x8] sm:$0xff]  ;;  %s1353_s8 = smov 64  }
  0x66   : > { %1166 = vset.pattern.permute.xlu0 %v1352_v0  ;;  %v319_v4 = vmin.f32 %v313_v2, 0.0  ;;  %v320_v5 = vmin.f32 %v314_v3, 0.0  ;;  %v317_v9 = vadd.f32 1.0, %v313_v2  ;;  %v318_v10 = vadd.f32 1.0, %v314_v3  ;;  %s1354_s17 = smov 96   ;;  %s1355_s22 = smov 32  }
  0x67   : > { %s304_s16 = scalar_select %p303_p5, %s1339_s25, 1  ;;  %vm315_vm0 = vcmp.gt.f32.partialorder %v313_v2, 0.0  ;;  %vm316_vm1 = vcmp.gt.f32.partialorder %v314_v3, 0.0  ;;  %vm408_vm2 = vcmask 1043456   ;;  %vm356_vm3 = vcmask 261120   ;;  %v334_v24 = vld [vmem:[%s1550_s15] sm:$0xff] }
  0x68   : > { %v321_v6 = vmul.f32 1.442695, %v319_v4  ;;  %v323_v7 = vmul.f32 1.442695, %v320_v5  ;;  %vm358_vm4 = vcmask 523264   ;;  %v340_v29 = vmin.f32 %v334_v24, 0.0 }
  0x69   : > { %s978_s19 = sshll.u32 %s304_s16, 3  ;;  %v335_v34 = vld [vmem:[%s1550_s15 + $0x8] sm:$0xff]  ;;  %v338_v37 = vadd.f32 1.0, %v334_v24  ;;  %vm336_vm5 = vcmp.gt.f32.partialorder %v334_v24, 0.0  ;;  %vm389_vm7 = vcmask 64512   ;;  %vm493_vm8 = vcmask 785408  }
  0x6a   : > { %s310_s7 = scalar_lea.vmem %s1729_s4, %s978_s19  ;;  %1167 = vpow2.f32 %v321_v6  ;;  %s306_s14 = scalar_lea.vmem %s1728_s3, %s978_s19  ;;  %v342_v33 = vmul.f32 1.442695, %v340_v29  ;;  %v341_v35 = vmin.f32 %v335_v34, 0.0  ;;  %v339_v40 = vadd.f32 1.0, %v335_v34 }
  0x6b   : > { %v312_v1 = vld [vmem:[%s310_s7] sm:$0xff]  ;;  %1169 = vpow2.f32 %v323_v7  ;;  %vm337_vm6 = vcmp.gt.f32.partialorder %v335_v34, 0.0  ;;  %vm1357_vm9 = vmmov 0   ;;  %s1637_s29 = sld [smem:[#allocation3]]  ;;  %s1639_s15 = sld [smem:[#allocation3 + $0x1]] }
  0x6c   : > { %329 = vperm.xlu0 %1166, %v312_v1   ;;  %v370_v17 = vld [vmem:[%s306_s14] sm:$0xff]  ;;  %1171 = vpow2.f32 %v342_v33  ;;  %v344_v36 = vmul.f32 1.442695, %v341_v35  ;;  %s1641_s21 = sld [smem:[#allocation3 + $0x2]]  ;;  %s977_s28 = sshll.u32 %s1546_s20, 3 }
  0x6d   : > { %v372_v18 = vpack.c.bf16 %v370_v17, %v370_v17  ;;  %v1356_v17 = vmov 0.0   ;;  %s997_s16 = sshll.u32 %s1339_s25, 7  ;;  %s302_s19 = scalar_lea.vmem [#allocation9], %s977_s28 }
  0x6e   : > { %1173 = vpow2.f32 %v344_v36  ;;  %1044 = vmatprep.subr.bf16.mxu1 %v1356_v17  ;;  %1056 = vmatprep.mubr.msk.bf16.mxu1 %vm1357_vm9, %v1356_v17  ;;  %s835_s18 = sshll.u32 %s302_s19, 4  ;;  %s1674_s9 = scalar_lea.hbm %s1730_s5, %s997_s16  ;;  %s1676_s18 = int_to_ptr.vmem [resolvable:$true] %s835_s18 }
  0x6f   : > { %1090 = vmatprep.subr.msk.bf16.mxu0 %vm408_vm2, %v372_v18  ;;  %v410_v19 = vsel %vm408_vm2, %v372_v18, 0  ;;  %s821_s13 = scalar_lea.sflag [#allocation6], %s1546_s20  ;;  %s1259_s14 = scalar_lea.vmem %s1676_s18, 128 }
  0x70   : > { %1031 = vmatpush3.bf16.msra.mxu0 %v410_v19  ;;  %p1260_p10 = scmp.ne.s32.totalorder %s1676_s18, %s1259_s14  ;;  %p1743_p12 = scmp.ne.s32.totalorder %s1735_s10, 0 }
  0x71   : > { %s1358_s25 = smov [#allocation9]  }
  0x72   : > { %p1261_p9 = pnand %p1260_p10, %p1743_p12 }
  0x74   : > { %v1168_v8 = vpop.eup %1167  ;;  %p1262_p1 = pneg %p1261_p9 }
  0x75   : > { %v1170_v11 = vpop.eup %1169  ;;  %v325_v12 = vsel %vm315_vm0, %v317_v9, %v1168_v8 }
  0x76   : > { %v326_v13 = vsel %vm316_vm1, %v318_v10, %v1170_v11  ;;  %v1172_v38 = vpop.eup %1171 }
  0x77   : > { %v346_v39 = vsel %vm336_vm5, %v338_v37, %v1172_v38 }
  0x78   : > { %v1174_v41 = vpop.eup %1173 }
  0x79   : > { %v347_v42 = vsel %vm337_vm6, %v339_v40, %v1174_v41 }
  0xeb   : > { %v330_v14 = vpop.permute.xlu0 %329 }
  0xec   : > { %v332_v15 = vmul.f32 %v330_v14, %v325_v12  ;;  %v333_v16 = vmul.f32 %v330_v14, %v326_v13 }
  0xee   : > { %353 = vrot.lane.b32.xlu1 %v333_v16, %s1353_s8  ;;  %349 = vrot.lane.b32.xlu0 %v332_v15, %s1354_s17 }
  0xf2   : > { %588 = vrot.lane.b32.xlu1 %v332_v15, %s1353_s8  ;;  %591 = vrot.lane.b32.xlu0 %v333_v16, %s1355_s22 }
  0xf6   : > { %622 = vrot.lane.b32.xlu0 %v372_v18, %s1354_s17 }
 0x160   : > { %v354_v20 = vpop.permute.xlu1 %353  ;;  %v350_v21 = vpop.permute.xlu0 %349 }
 0x161   : > { %v357_v22 = vsel %vm356_vm3, %v332_v15, %v350_v21 }
 0x162   : > { %v359_v23 = vsel %vm358_vm4, %v357_v22, %v354_v20 }
 0x163   : > { %v371_v25 = vpack.c.bf16 %v359_v23, %v359_v23  ;;  %v494_v53 = vsel %vm493_vm8, %v359_v23, 0.0 }
 0x164   : > { %v589_v26 = vpop.permute.xlu1 %588  ;;  %v592_v27 = vpop.permute.xlu0 %591  ;;  %v495_v54 = vrot.slane %v494_v53, 4 }
 0x165   : > { %v594_v28 = vsel %vm356_vm3, %v350_v21, %v589_v26  ;;  %373 = vxpose.xlu1.c.b16.start.end [1/1] (short) (narrow) %v371_v25, 96 }
 0x166   : > { %v595_v30 = vsel %vm358_vm4, %v594_v28, %v592_v27  ;;  %v496_v58 = vadd.f32 %v495_v54, %v494_v53 }
 0x167   : > { %v604_v31 = vpack.c.bf16 %v595_v30, %v595_v30  ;;  %v726_v55 = vsel %vm493_vm8, %v595_v30, 0.0 }
 0x168   : > { %v623_v32 = vpop.permute.xlu0 %622  ;;  %v727_v57 = vrot.slane %v726_v55, 4  ;;  %v497_v60 = vrot.slane %v496_v58, 2 }
 0x169   : > { %605 = vxpose.xlu0.c.b16.start.end [1/1] (short) (narrow) %v604_v31, 96  ;;  %1091 = vmatprep.subr.msk.bf16.mxu0 %vm408_vm2, %v623_v32  ;;  %v643_v45 = vsel %vm408_vm2, %v623_v32, 0 }
 0x16a   : > { %v728_v59 = vadd.f32 %v727_v57, %v726_v55  ;;  %v498_v0 = vadd.f32 %v497_v60, %v496_v58 }
 0x16c   : > { %v729_v63 = vrot.slane %v728_v59, 2  ;;  %v499_v4 = vrot.slane %v498_v0, 1 }
 0x16e   : > { %v730_v3 = vadd.f32 %v729_v63, %v728_v59  ;;  %v500_v10 = vadd.f32 %v499_v4, %v498_v0 }
 0x170   : > { %v731_v6 = vrot.slane %v730_v3, 1 }
 0x172   : > { %v732_v14 = vadd.f32 %v731_v6, %v730_v3 }
 0x17d   : > { %361 = vrot.lane.b32.xlu1 %v346_v39, %s1354_s17 }
 0x181   : > { %596 = vrot.lane.b32.xlu1 %v346_v39, %s1353_s8 }
 0x185   : > { %599 = vrot.lane.b32.xlu1 %v347_v42, %s1355_s22 }
 0x186   : > { %365 = vrot.lane.b32.xlu0 %v347_v42, %s1353_s8 }
 0x1cb   : > { %v381_v43 = vpop.trf.xlu1 }
 0x1cc   : > { %1032 = vmatprep.mubr.msk.bf16.mxu0 %vm389_vm7, %v381_v43 }
 0x1cf   : > { %v382_v44 = vpop.trf.xlu1  ;;  %v613_v47 = vpop.trf.xlu0 }
 0x1d0   : > { %1033 = vmatmul.mubr.msk.bf16.vlgmr.msra.gmra.mrb[0].mxu0 %vm389_vm7, %v382_v44 }
 0x1d1   : > { %1061 = vmatpush3.bf16.msra.mxu0 %v643_v45 }
 0x1d3   : > { %v383_v46 = vpop.trf.xlu1  ;;  %v614_v49 = vpop.trf.xlu0 }
 0x1d4   : > { %1036 = vmatprep.mubr.msk.bf16.mxu0 %vm389_vm7, %v383_v46 }
 0x1d7   : > { %v384_v48 = vpop.trf.xlu1  ;;  %v615_v52 = vpop.trf.xlu0 }
 0x1d8   : > { %1037 = vmatmul.mubr.msk.bf16.gmra.mrb[4].mxu0 %vm389_vm7, %v384_v48 }
 0x1db   : > { %v385_v50 = vpop.trf.xlu1  ;;  %v616_v56 = vpop.trf.xlu0 }
 0x1dc   : > { %1040 = vmatprep.mubr.msk.bf16.mxu0 %vm389_vm7, %v385_v50 }
 0x1df   : > { %v386_v51 = vpop.trf.xlu1  ;;  %v617_v61 = vpop.trf.xlu0 }
 0x1e0   : > { %1041 = vmatmul.mubr.msk.bf16.gmra.mrb[8].mxu0 %vm389_vm7, %v386_v51 }
 0x1e1   : > { %1062 = vmatprep.mubr.msk.bf16.mxu0 %vm389_vm7, %v613_v47 }
 0x1e3   : > { %v618_v1 = vpop.trf.xlu0 }
 0x1e8   : > { %1063 = vmatmul.mubr.msk.bf16.vlgmr.msra.gmra.mrb[12].mxu0 %vm389_vm7, %v614_v49 }
 0x1e9   : > { %1066 = vmatprep.mubr.msk.bf16.mxu0 %vm389_vm7, %v615_v52 }
 0x1ef   : > { %v362_v62 = vpop.permute.xlu1 %361 }
 0x1f0   : > { %1067 = vmatmul.mubr.msk.bf16.gmra.mrb[16].mxu0 %vm389_vm7, %v616_v56  ;;  %v368_v5 = vsel %vm356_vm3, %v346_v39, %v362_v62 }
 0x1f1   : > { %1070 = vmatprep.mubr.msk.bf16.mxu0 %vm389_vm7, %v617_v61 }
 0x1f3   : > { %v597_v2 = vpop.permute.xlu1 %596 }
 0x1f4   : > { %v602_v7 = vsel %vm356_vm3, %v362_v62, %v597_v2 }
 0x1f7   : > { %v600_v8 = vpop.permute.xlu1 %599 }
 0x1f8   : > { %1071 = vmatmul.mubr.msk.bf16.gmra.mrb[20].mxu0 %vm389_vm7, %v618_v1  ;;  %v366_v9 = vpop.permute.xlu0 %365  ;;  %v1609_v13 = vsel %vm358_vm4, %v602_v7, %v600_v8  ;;  %v508_v7 = vstv %s1637_s29  ;;  %v521_v8 = vstv %s1639_s15 }
 0x1f9   : > { %v1605_v11 = vsel %vm358_vm4, %v368_v5, %v366_v9  ;;  %v733_v15 = vmul.f32 %v732_v14, %v1609_v13 }
 0x1fa   : > { %v501_v12 = vmul.f32 %v500_v10, %v1605_v11 }
 0x1fb   : > { %v734_v24 = vsel %vm356_vm3, %v733_v15, 0.0 }
 0x1fc   : > { %524 = vrot.lane.b32.xlu1 %v501_v12, %s1353_s8  ;;  %512 = vrot.lane.b32.xlu0 %v501_v12, %s1354_s17  ;;  %v502_v16 = vsel %vm356_vm3, %v501_v12, 0.0  ;;  %v533_v12 = vstv %s1641_s21 }
 0x200   : > { %752 = vrot.lane.b32.xlu1 %v733_v15, %s1353_s8  ;;  %742 = vrot.lane.b32.xlu0 %v733_v15, %s1354_s17  ;;  %s1263_s8 = sshll.u32 %s1358_s25, 4  ;;  %s1264_s8 = int_to_ptr.vmem [resolvable:$false] %s1263_s8 }
 0x201   : > { %s1265_s17 = scalar_lea.vmem %s1264_s8, 256  ;;  %p1266_p3 = scmp.lt.s32.totalorder %s1676_s18, %s1264_s8 }
 0x202   : > { %p1267_p6 = scmp.lt.s32.totalorder %s1265_s17, %s1259_s14 }
 0x204   : > { %p1268_p7 = por %p1267_p6, %p1266_p3 }
 0x206   : > { %p1269_p0 = pnand %p1268_p7, %p1262_p1 }
 0x21f   : > { %503 = vadd.xlane.f32.xlu0 %v502_v16 }
 0x26e   : > { %v525_v18 = vpop.permute.xlu1 %524  ;;  %v513_v19 = vpop.permute.xlu0 %512 }
 0x26f   : > { %v515_v20 = vsel %vm356_vm3, %v513_v19, 0.0  ;;  %v527_v21 = vsel %vm356_vm3, %v525_v18, 0.0 }
 0x270   : > { %516 = vadd.xlane.f32.xlu1 %v515_v20  ;;  %528 = vadd.xlane.f32.xlu0 %v527_v21 }
 0x272   : > { %v743_v22 = vpop.permute.xlu0 %742  ;;  %v753_v25 = vpop.permute.xlu1 %752 }
 0x273   : > { %v745_v23 = vsel %vm356_vm3, %v743_v22, 0.0  ;;  %v755_v26 = vsel %vm356_vm3, %v753_v25, 0.0 }
 0x274   : > { %746 = vadd.xlane.f32.xlu1 %v745_v23  ;;  %735 = vadd.xlane.f32.xlu0 %v734_v24 }
 0x278   : > { %756 = vadd.xlane.f32.xlu0 %v755_v26 }
 0x2a3   : > { %v1034_v27 = vpop.f32.mrb[0].mxu0 }
 0x2a4   : > { %v446_v28 = vpop.f32.mrb[1].mxu0 }
 0x2a5   : > { %v1035_v29 = vpop.f32.mrb[2].mxu0 }
 0x2a6   : > { %v540_v30 = vpack.c.bf16 %v1035_v29, %v1034_v27  ;;  %v449_v31 = vpop.f32.mrb[3].mxu0 }
 0x2a7   : > { %v539_v32 = vpack.c.bf16 %v449_v31, %v446_v28 }
 0x2a9   : > { %1045 = vmatpush3.bf16.msra.mxu1 %v539_v32 }
 0x2aa   : > { %1046 = vmatprep.subr.bf16.mxu1 %v1356_v17 }
 0x2ab   : > { %v1038_v33 = vpop.f32.mrb[4].mxu0 }
 0x2ac   : > { %v462_v34 = vpop.f32.mrb[5].mxu0  ;;  %v504_v63 = vpop.xlane.xlu0 %503 }
 0x2ad   : > { %v1039_v35 = vpop.f32.mrb[6].mxu0  ;;  %1047 = vmatpush3.bf16.msra.mxu1 %v540_v30  ;;  %v505_v0 = vadd.f32 1e-06, %v504_v63 }
 0x2ae   : > { %v542_v36 = vpack.c.bf16 %v1039_v35, %v1038_v33  ;;  %v465_v37 = vpop.f32.mrb[7].mxu0  ;;  %1048 = vmatprep.subr.bf16.mxu1 %v1356_v17 }
 0x2af   : > { %v541_v38 = vpack.c.bf16 %v465_v37, %v462_v34  ;;  %1175 = vrcp.f32 %v505_v0 }
 0x2b1   : > { %1049 = vmatpush3.bf16.msra.mxu1 %v541_v38 }
 0x2b2   : > { %1050 = vmatprep.subr.bf16.mxu1 %v1356_v17 }
 0x2b3   : > { %v1042_v39 = vpop.f32.mrb[8].mxu0 }
 0x2b4   : > { %v478_v40 = vpop.f32.mrb[9].mxu0 }
 0x2b5   : > { %v1043_v41 = vpop.f32.mrb[10].mxu0  ;;  %1051 = vmatpush3.bf16.msra.mxu1 %v542_v36 }
 0x2b6   : > { %v544_v42 = vpack.c.bf16 %v1043_v41, %v1042_v39  ;;  %v481_v43 = vpop.f32.mrb[11].mxu0  ;;  %1052 = vmatprep.subr.bf16.mxu1 %v1356_v17 }
 0x2b7   : > { %v543_v44 = vpack.c.bf16 %v481_v43, %v478_v40 }
 0x2b9   : > { %1053 = vmatpush3.bf16.msra.mxu1 %v543_v44  ;;  %v1176_v6 = vpop.eup %1175 }
 0x2ba   : > { %1054 = vmatprep.subr.bf16.mxu1 %v1356_v17  ;;  %v509_v10 = vmul.f32 %v1176_v6, %v508_v7 }
 0x2bb   : > { %v1064_v45 = vpop.f32.mrb[12].mxu0 }
 0x2bc   : > { %v679_v46 = vpop.f32.mrb[13].mxu0  ;;  %v510_v22 = vmul.f32 %v509_v10, %v1605_v11 }
 0x2bd   : > { %v1065_v47 = vpop.f32.mrb[14].mxu0  ;;  %1055 = vmatpush3.bf16.msra.mxu1 %v544_v42 }
 0x2be   : > { %v766_v48 = vpack.c.bf16 %v1065_v47, %v1064_v45  ;;  %v682_v49 = vpop.f32.mrb[15].mxu0  ;;  %1074 = vmatprep.subr.bf16.mxu1 %v1356_v17 }
 0x2bf   : > { %v765_v50 = vpack.c.bf16 %v682_v49, %v679_v46 }
 0x2c3   : > { %v1068_v51 = vpop.f32.mrb[16].mxu0 }
 0x2c4   : > { %v695_v52 = vpop.f32.mrb[17].mxu0 }
 0x2c5   : > { %v1069_v53 = vpop.f32.mrb[18].mxu0 }
 0x2c6   : > { %v768_v54 = vpack.c.bf16 %v1069_v53, %v1068_v51  ;;  %v698_v55 = vpop.f32.mrb[19].mxu0 }
 0x2c7   : > { %v767_v56 = vpack.c.bf16 %v698_v55, %v695_v52 }
 0x2cb   : > { %v1631_v57 = vpop.f32.mrb[20].mxu0 }
 0x2cc   : > { %v711_v58 = vpop.f32.mrb[21].mxu0 }
 0x2cd   : > { %v1633_v59 = vpop.f32.mrb[22].mxu0 }
 0x2ce   : > { %v770_v60 = vpack.c.bf16 %v1633_v59, %v1631_v57  ;;  %v714_v61 = vpop.f32.mrb[23].mxu0 }
 0x2cf   : > { %v769_v62 = vpack.c.bf16 %v714_v61, %v711_v58 }
 0x2fd   : > { %v517_v1 = vpop.xlane.xlu1 %516  ;;  %v529_v2 = vpop.xlane.xlu0 %528 }
 0x2fe   : > { %v518_v3 = vadd.f32 1e-06, %v517_v1  ;;  %v530_v4 = vadd.f32 1e-06, %v529_v2 }
 0x300   : > { %1177 = vrcp.f32 %v518_v3 }
 0x301   : > { %1179 = vrcp.f32 %v530_v4  ;;  %v736_v5 = vpop.xlane.xlu0 %735  ;;  %v747_v9 = vpop.xlane.xlu1 %746 }
 0x302   : > { %v748_v19 = vadd.f32 1e-06, %v747_v9  ;;  %v737_v21 = vadd.f32 1e-06, %v736_v5 }
 0x304   : > { %1181 = vrcp.f32 %v748_v19 }
 0x305   : > { %v757_v15 = vpop.xlane.xlu0 %756  ;;  %1183 = vrcp.f32 %v737_v21 }
 0x306   : > { %v758_v24 = vadd.f32 1e-06, %v757_v15 }
 0x308   : > { %1185 = vrcp.f32 %v758_v24 }
 0x30a   : > { %v1178_v14 = vpop.eup %1177 }
 0x30b   : > { %v1180_v16 = vpop.eup %1179  ;;  %v522_v18 = vmul.f32 %v1178_v14, %v521_v8 }
 0x30c   : > { %v534_v20 = vmul.f32 %v1180_v16, %v533_v12 }
 0x30d   : > { %v523_v23 = vmul.f32 %v522_v18, %v1605_v11 }
 0x30e   : > { %v535_v25 = vmul.f32 %v534_v20, %v1605_v11  ;;  %v1182_v29 = vpop.eup %1181 }
 0x30f   : > { %v536_v26 = vsel %vm356_vm3, %v510_v22, %v523_v23  ;;  %v1184_v11 = vpop.eup %1183  ;;  %v750_v31 = vmul.f32 %v1182_v29, %v521_v8 }
 0x310   : > { %v537_v27 = vsel %vm358_vm4, %v536_v26, %v535_v25  ;;  %v739_v32 = vmul.f32 %v1184_v11, %v508_v7 }
 0x311   : > { %v538_v28 = vpack.c.bf16 %v537_v27, %v537_v27  ;;  %v751_v34 = vmul.f32 %v750_v31, %v1609_v13 }
 0x312   : > { %v1186_v30 = vpop.eup %1185  ;;  %v740_v35 = vmul.f32 %v739_v32, %v1609_v13 }
 0x313   : > { %1057 = vmatmul.mubr.msk.bf16.vlgmr.msra.gmra.mrb[0].mxu1 %vm493_vm8, %v538_v28  ;;  %v760_v33 = vmul.f32 %v1186_v30, %v533_v12 }
 0x314   : > { %1075 = vmatpush3.bf16.msra.mxu1 %v765_v50  ;;  %1086 = vmatprep.mubr.msk.bf16.mxu1 %vm1357_vm9, %v1356_v17  ;;  %v762_v37 = vsel %vm356_vm3, %v740_v35, %v751_v34 }
 0x315   : > { %1076 = vmatprep.subr.bf16.mxu1 %v1356_v17  ;;  %v761_v36 = vmul.f32 %v760_v33, %v1609_v13 }
 0x317   : > { %v763_v38 = vsel %vm358_vm4, %v762_v37, %v761_v36 }
 0x318   : > { %1077 = vmatpush3.bf16.msra.mxu1 %v766_v48  ;;  %v764_v39 = vpack.c.bf16 %v763_v38, %v763_v38 }
 0x319   : > { %1078 = vmatprep.subr.bf16.mxu1 %v1356_v17 }
 0x31c   : > { %1079 = vmatpush3.bf16.msra.mxu1 %v767_v56 }
 0x31d   : > { %1080 = vmatprep.subr.bf16.mxu1 %v1356_v17 }
 0x320   : > { %1081 = vmatpush3.bf16.msra.mxu1 %v768_v54 }
 0x321   : > { %1082 = vmatprep.subr.bf16.mxu1 %v1356_v17 }
 0x324   : > { %1083 = vmatpush3.bf16.msra.mxu1 %v769_v62 }
 0x325   : > { %1084 = vmatprep.subr.bf16.mxu1 %v1356_v17 }
 0x328   : > { %1085 = vmatpush3.bf16.msra.mxu1 %v770_v60 }
 0x32b   : > { %1087 = vmatmul.mubr.msk.bf16.vlgmr.msra.gmra.mrb[4].mxu1 %vm493_vm8, %v764_v39 }
 0x3e6   : > { %v582_v40 = vpop.f32.mrb[0].mxu1 }
 0x3e7   : > { %v1058_v41 = vpop.f32.mrb[1].mxu1 }
 0x3e8   : > { %v585_v42 = vpop.f32.mrb[2].mxu1 }
 0x3e9   : > { %v1059_v13 = vpop.f32.mrb[3].mxu1 }
 0x3fe   : > { %v808_v43 = vpop.f32.mrb[4].mxu1 }
 0x3ff   : > { %815 = vrot.lane.b32.xlu1 %v808_v43, %s1355_s22  ;;  %v1088_v17 = vpop.f32.mrb[5].mxu1 }
 0x400   : > { %v811_v44 = vpop.f32.mrb[6].mxu1 }
 0x401   : > { %v1089_v45 = vpop.f32.mrb[7].mxu1 }
 0x471   : > { %v816_v46 = vpop.permute.xlu1 %815 }
 0x472   : > { %v818_v47 = vsel %vm356_vm3, %v582_v40, %v816_v46 }
 0x473   : > { %819 = vst.msk [vmem:[%s302_s19] sm:$0xff] %vm358_vm4, %v818_v47 }
 0x474   : > { %1272 = shalt.err (!%p1269_p0)
}
 0x475   : > { %s1273_s20 = scalar_lea.hbm %s1674_s9, 128  ;;  %s1277_s15 = scalar_lea.hbm %s1730_s5, 256 }
 0x476   : > { %p1274_p2 = scmp.ne.s32.totalorder %s1674_s9, %s1273_s20  ;;  %p1278_p4 = scmp.lt.u32.totalorder %s1674_s9, %s1730_s5 }
 0x477   : > { %p1279_p13 = scmp.lt.u32.totalorder %s1277_s15, %s1273_s20  ;;  %p1281_p10 = scmp.lt.u32.totalorder %s1273_s20, %s1674_s9 }
 0x478   : > { %p1275_p8 = pnand %p1274_p2, %p1743_p12 }
 0x479   : > { %p1280_p5 = por %p1279_p13, %p1278_p4 }
 0x47a   : > { %p1276_p11 = pneg %p1275_p8 }
 0x47b   : > { %p1282_p9 = por %p1281_p10, %p1280_p5 }
 0x47d   : > { %p1283_p1 = pnand %p1282_p9, %p1276_p11 }
 0x47f   : > { %1286 = shalt.err (!%p1283_p1)
}
 0x480   : > { %1096 = dma.vmem_to_hbm [thread:$0]  (%p1743_p12), %s1676_s18, 128, %s1674_s9, %s821_s13  }
 0x481 PF: > { %s847_s16 = sand.u32 1, %s1327_s0   ;;  %p1744_p3 = scmp.ne.s32.totalorder %s1736_s12, 0 }
 0x482   : > { %p1745_p6 = scmp.ge.s32.totalorder %s1347_s27, 2  ;;  %s848_s19 = scalar_lea.sflag [#allocation6], %s847_s16 }
 0x484   : > { %p1106_p7 = pnand %p1745_p6, %p1744_p3 }
 0x486   : > { %1322 = dma.done.wait (!%p1106_p7), %s848_s19, 128  }
 0x487   : > { %1324 = vsyncadd (!%p1106_p7), %s848_s19, 4294967168  ;;  %s30_s27 = sadd.s32 1, %s1347_s27   ;;  %s1746_s0 = smov %s1331_s23 }
 0x488   : > { %p27_p0 = scmp.ge.s32.totalorder %s30_s27, 4   ;;  %s1747_s23 = smov %s1335_s24 }
 0x489   : > { %s1748_s24 = smov %s1448_s11  ;;  %s1749_s25 = smov %s1343_s26 }
 0x48a   : > { %s1750_s26 = smov %s1752_s30  ;;  %29 = sbr.rel (!%p27_p0) target bundleno = 23 (0x17), region = 100 }
 0x491   :  { %853 = vsyncpa [#allocation5], 1 }
 0x492   :  { %855 = vsyncpa [#allocation5 + $0x1], 1 }
 0x493   :  { %856 = vsyncpa [#allocation8], 1 }
 0x494   :  { %858 = vsyncpa [#allocation8 + $0x1], 1 }
 0x495   :  { %859 = vsyncpa [#allocation6], 1 }
 0x496   :  { %861 = vsyncpa [#allocation6 + $0x1], 1 }

</bundles_post_ra>
